<compile_context>
chip_gen: v6e
topology: v6e:2x2x1
jax: 0.10.0
libtpu: 0.0.40
codegen_flags: <defaults>
</compile_context>

<pallas_src>
import functools

import jax
import jax.numpy as jnp
from jax.experimental import pallas as pl
from jax.experimental.pallas import tpu as pltpu

LAYERNORM_EPS = 1e-5  # nn.LayerNorm default eps.


def _round_up(x: int, m: int) -> int:
    return ((x + m - 1) // m) * m


def _layer_norm_rows(x_f32, gamma_f32, beta_f32):
    """LayerNorm over the last axis in f32. x: (C, H); gamma/beta: (1, H)."""
    mu = jnp.mean(x_f32, axis=-1, keepdims=True)
    xc = x_f32 - mu
    var = jnp.mean(xc * xc, axis=-1, keepdims=True)
    inv = jax.lax.rsqrt(var + LAYERNORM_EPS)
    return xc * inv * gamma_f32 + beta_f32


# ---------------------------------------------------------------------------
# Path 1: token table resident in VMEM (single copy), on-chip chunked gather
#         fused directly into the LayerNorm (no scratch buffer).
# ---------------------------------------------------------------------------
def _embed_ln_vmem_table_kernel(ids_ref,              # SMEM scalar prefetch, (N_pad,)
                                tbl_ref,              # (V, H) whole table in VMEM
                                gamma_ref, beta_ref,  # (1, H) f32, whole in VMEM
                                out_ref,              # (T, H) output block
                                *, tile_tokens, rows_per_chunk):
    i = pl.program_id(0)
    base = i * tile_tokens
    gamma = gamma_ref[...]
    beta = beta_ref[...]
    n_chunks = tile_tokens // rows_per_chunk

    def do_chunk(c, carry):
        cbase = base + c * rows_per_chunk
        # Static unroll of the row gather; rows are assembled into one dense
        # (chunk, H) tile so the LN math and the store use full vregs.
        rows = [tbl_ref[pl.ds(ids_ref[cbase + r], 1), :]
                for r in range(rows_per_chunk)]
        x = jnp.concatenate(rows, axis=0).astype(jnp.float32)
        y = _layer_norm_rows(x, gamma, beta)
        off = pl.multiple_of(c * rows_per_chunk, rows_per_chunk)
        out_ref[pl.ds(off, rows_per_chunk), :] = y.astype(out_ref.dtype)
        return carry

    jax.lax.fori_loop(0, n_chunks, do_chunk, 0)


# ---------------------------------------------------------------------------
# Path 2: table stays in HBM; chunked row-DMA gather, double-buffered within
#         the grid step (self-contained step => "parallel" grid semantics).
# ---------------------------------------------------------------------------
def _embed_ln_hbm_gather_kernel(ids_ref,              # SMEM scalar prefetch, (N_pad,)
                                tbl_hbm_ref,          # (V, H) table in HBM (pl.ANY)
                                gamma_ref, beta_ref,  # (1, H) f32, whole in VMEM
                                out_ref,              # (T, H) output block
                                buf_ref,              # VMEM (2, C, H) chunk buffers
                                sem_ref,              # DMA semaphores, (2,)
                                *, tile_tokens, rows_per_chunk):
    i = pl.program_id(0)
    base = i * tile_tokens
    C = rows_per_chunk
    n_chunks = tile_tokens // C
    gamma = gamma_ref[...]
    beta = beta_ref[...]

    def issue_chunk(c, slot):
        cbase = base + c * C
        for r in range(C):                      # bounded DMA queue depth (C rows)
            tok = ids_ref[cbase + r]
            pltpu.make_async_copy(
                tbl_hbm_ref.at[pl.ds(tok, 1), :],
                buf_ref.at[slot, pl.ds(r, 1), :],
                sem_ref.at[slot],
            ).start()

    def wait_chunk(slot):
        # One aggregate wait: DMA semaphores count bytes, so a descriptor sized
        # for the whole (C, H) chunk drains exactly the C row copies above.
        pltpu.make_async_copy(
            tbl_hbm_ref.at[pl.ds(0, C), :],
            buf_ref.at[slot],
            sem_ref.at[slot],
        ).wait()

    issue_chunk(0, 0)                           # prime chunk 0

    def do_chunk(c, carry):
        slot = jax.lax.rem(c, 2)

        @pl.when(c + 1 < n_chunks)              # prefetch next chunk, interleaved
        def _():
            issue_chunk(c + 1, 1 - slot)

        wait_chunk(slot)
        x = buf_ref[slot].astype(jnp.float32)
        y = _layer_norm_rows(x, gamma, beta)
        off = pl.multiple_of(c * C, C)
        out_ref[pl.ds(off, C), :] = y.astype(out_ref.dtype)
        return carry

    jax.lax.fori_loop(0, n_chunks, do_chunk, 0)


# ---------------------------------------------------------------------------
# Wrapper
# ---------------------------------------------------------------------------
def _vmem_capacity_bytes() -> int:
    try:
        cap = int(pltpu.get_tpu_info().vmem_capacity_bytes)
        if cap > 0:
            return cap
    except Exception:
        pass
    return 64 * 1024 * 1024  # conservative (v7x per-TC)


def _pick_chunk(tile: int, vocab: int) -> int:
    for c in (32, 16, 8):
        if tile % c == 0 and c <= vocab:
            return c
    return 8


@functools.partial(jax.jit, static_argnames=("tile_tokens", "force_hbm_gather"))
def flexbert_sans_position_embeddings(input_ids, tok_table, gamma, beta,
                                      position_ids=None, *,
                                      tile_tokens=1024,
                                      force_hbm_gather=False):
    """input_ids: (B, S) int32 -> (B, S, H) in tok_table.dtype.

    position_ids is accepted for API parity with the PyTorch module but ignored.
    """
    del position_ids
    B, S = input_ids.shape
    V, H = tok_table.shape
    N = B * S
    out_dtype = tok_table.dtype
    itemsize = jnp.dtype(out_dtype).itemsize

    # --- tile of tokens per grid step: multiple of 8, never larger than N ---
    if N >= 8:
        T = max(8, (min(int(tile_tokens), N) // 8) * 8)
        pad_out = False
    else:                     # tiny-input corner case: pad output + slice
        T = 8
        pad_out = True
    chunk = _pick_chunk(T, V)
    n_tiles = -(-N // T)
    N_pad = n_tiles * T
    out_rows = N_pad if pad_out else N

    ids_flat = input_ids.reshape(-1).astype(jnp.int32)
    if N_pad != N:
        # Pad with token id 0 (valid row); padded rows are masked on writeback.
        ids_flat = jnp.pad(ids_flat, (0, N_pad - N))

    gamma2 = gamma.reshape(1, H).astype(jnp.float32)
    beta2 = beta.reshape(1, H).astype(jnp.float32)

    # --- resident-table decision, per-generation VMEM capacity -------------
    vmem_cap = _vmem_capacity_bytes()
    table_bytes = V * H * itemsize
    out_buf_bytes = 2 * T * H * itemsize            # double-buffered output tile
    resident_foot = table_bytes + out_buf_bytes + 2 * H * 4 + (2 << 20)
    use_vmem_table = (not force_hbm_gather) and resident_foot <= int(0.7 * vmem_cap)

    if use_vmem_table:
        grid_spec = pltpu.PrefetchScalarGridSpec(
            num_scalar_prefetch=1,
            grid=(n_tiles,),
            in_specs=[
                # Whole table in VMEM, single copy (no double-buffering).
                pl.BlockSpec(memory_space=pltpu.MemorySpace.VMEM),
                pl.BlockSpec(memory_space=pltpu.MemorySpace.VMEM),   # gamma
                pl.BlockSpec(memory_space=pltpu.MemorySpace.VMEM),   # beta
            ],
            out_specs=pl.BlockSpec((T, H), lambda i, ids: (i, 0)),
            scratch_shapes=[],
        )
        kernel = functools.partial(_embed_ln_vmem_table_kernel,
                                   tile_tokens=T, rows_per_chunk=chunk)
        vmem_limit = resident_foot + (8 << 20)
    else:
        grid_spec = pltpu.PrefetchScalarGridSpec(
            num_scalar_prefetch=1,
            grid=(n_tiles,),
            in_specs=[
                pl.BlockSpec(memory_space=pl.ANY),                   # table in HBM
                pl.BlockSpec(memory_space=pltpu.MemorySpace.VMEM),   # gamma
                pl.BlockSpec(memory_space=pltpu.MemorySpace.VMEM),   # beta
            ],
            out_specs=pl.BlockSpec((T, H), lambda i, ids: (i, 0)),
            scratch_shapes=[
                pltpu.VMEM((2, chunk, H), tok_table.dtype),          # chunk buffers
                pltpu.SemaphoreType.DMA((2,)),
            ],
        )
        kernel = functools.partial(_embed_ln_hbm_gather_kernel,
                                   tile_tokens=T, rows_per_chunk=chunk)
        vmem_limit = out_buf_bytes + 2 * chunk * H * itemsize + (16 << 20)

    vmem_limit = int(min(max(vmem_limit, 16 << 20), vmem_cap))

    out = pl.pallas_call(
        kernel,
        out_shape=jax.ShapeDtypeStruct((out_rows, H), out_dtype),
        grid_spec=grid_spec,
        compiler_params=pltpu.CompilerParams(
            dimension_semantics=("parallel",),      # independent tiles (megacore)
            vmem_limit_bytes=vmem_limit,
        ),
    )(ids_flat, tok_table, gamma2, beta2)

    if pad_out:
        out = out[:N]
    return out.reshape(B, S, H)


# ---------------------------------------------------------------------------
# Pure-JAX reference
# ---------------------------------------------------------------------------
def _reference(input_ids, tok_table, gamma, beta):
    x = tok_table[input_ids].astype(jnp.float32)
    mu = jnp.mean(x, axis=-1, keepdims=True)
    var = jnp.mean((x - mu) ** 2, axis=-1, keepdims=True)
    y = (x - mu) * jax.lax.rsqrt(var + LAYERNORM_EPS) * gamma + beta
    return y.astype(tok_table.dtype)


if __name__ == "__main__":
    # Small "config": vocab_size=64, hidden_size=128, pad_token_id=0,
    # embed_norm=True (LayerNorm), embed_dropout_prob=0.0 (Identity).
    B, S, H = 2, 40, 128            # N=80: exercises partial (masked) final blocks
    VOCAB, PAD_ID = 64, 0

    key = jax.random.PRNGKey(0)
    k_tok, k_g, k_b, k_ids = jax.random.split(key, 4)

    tok_table = 0.02 * jax.random.normal(k_tok, (VOCAB, H), dtype=jnp.float32)
    tok_table = tok_table.at[PAD_ID].set(0.0)     # nn.Embedding padding_idx row
    gamma = 1.0 + 0.1 * jax.random.normal(k_g, (H,), dtype=jnp.float32)
    beta = 0.1 * jax.random.normal(k_b, (H,), dtype=jnp.float32)
    input_ids = jax.random.randint(k_ids, (B, S), 0, VOCAB, dtype=jnp.int32)

    ref = _reference(input_ids, tok_table, gamma, beta)

    # Path 1 (auto): table resident in VMEM, single tile.
    out1 = jax.block_until_ready(
        flexbert_sans_position_embeddings(input_ids, tok_table, gamma, beta))
    assert out1.shape == (B, S, H)
    assert jnp.allclose(out1, ref, atol=1e-5, rtol=1e-5), "VMEM-table path mismatch"

    # Path 1, multiple tiles + masked final block.
    out2 = jax.block_until_ready(
        flexbert_sans_position_embeddings(input_ids, tok_table, gamma, beta,
                                          tile_tokens=32))
    assert jnp.allclose(out2, ref, atol=1e-5, rtol=1e-5), "multi-tile path mismatch"

    # Path 2 (forced): HBM table, chunked DMA gather double-buffered in-step.
    out3 = jax.block_until_ready(
        flexbert_sans_position_embeddings(input_ids, tok_table, gamma, beta,
                                          tile_tokens=64, force_hbm_gather=True))
    assert jnp.allclose(out3, ref, atol=1e-5, rtol=1e-5), "HBM-gather path mismatch"

    # TODO(synk): dropout with embed_dropout_prob > 0 not implemented; the
    # module's default here is Identity (prob=0.0 / eval mode).
    print("KERNEL_OK")
</pallas_src>

<mosaic_0001>
module attributes {stable_mosaic.version = 11 : i64} {
  func.func @_embed_ln_vmem_table_kernel(%arg0: i32, %arg1: memref<80xi32, #tpu.memory_space<smem>>, %arg2: memref<64x128xf32, #tpu.memory_space<vmem>>, %arg3: memref<1x128xf32, #tpu.memory_space<vmem>>, %arg4: memref<1x128xf32, #tpu.memory_space<vmem>>, %arg5: memref<80x128xf32, #tpu.memory_space<vmem>>) attributes {dimension_semantics = [#tpu.dimension_semantics<parallel>], iteration_bounds = array<i64: 1>, scalar_prefetch = 1 : i64, scratch_operands = 0 : i64, tpu.core_type = #tpu.core_type<tc>, window_params = [{pipeline_mode = #tpu.pipeline_mode<synchronous>, transform_indices = @transform_0, window_bounds = array<i64: 64, 128>}, {pipeline_mode = #tpu.pipeline_mode<synchronous>, transform_indices = @transform_1, window_bounds = array<i64: 1, 128>}, {pipeline_mode = #tpu.pipeline_mode<synchronous>, transform_indices = @transform_2, window_bounds = array<i64: 1, 128>}, {transform_indices = @transform_3, window_bounds = array<i64: 80, 128>}]} {
    %c80_i32 = arith.constant 80 : i32
    %0 = arith.muli %arg0, %c80_i32 : i32
    %c0 = arith.constant 0 : index
    %c0_0 = arith.constant 0 : index
    %1 = vector.load %arg3[%c0, %c0_0] : memref<1x128xf32, #tpu.memory_space<vmem>>, vector<1x128xf32>
    %c0_1 = arith.constant 0 : index
    %c0_2 = arith.constant 0 : index
    %2 = vector.load %arg4[%c0_1, %c0_2] : memref<1x128xf32, #tpu.memory_space<vmem>>, vector<1x128xf32>
    %c0_i32 = arith.constant 0 : i32
    %c5_i32 = arith.constant 5 : i32
    %3 = arith.addi %c0_i32, %c5_i32 : i32
    %c1_i32 = arith.constant 1 : i32
    scf.for %arg6 = %c0_i32 to %3 step %c1_i32  : i32 {
      %c16_i32 = arith.constant 16 : i32
      %4 = arith.muli %arg6, %c16_i32 : i32
      %5 = arith.addi %0, %4 : i32
      %c0_i32_4 = arith.constant 0 : i32
      %6 = arith.addi %5, %c0_i32_4 : i32
      %7 = arith.index_cast %6 : i32 to index
      %8 = memref.load %arg1[%7] : memref<80xi32, #tpu.memory_space<smem>>
      %9 = arith.index_cast %8 : i32 to index
      %c0_5 = arith.constant 0 : index
      %10 = vector.load %arg2[%9, %c0_5] : memref<64x128xf32, #tpu.memory_space<vmem>>, vector<1x128xf32>
      %c1_i32_6 = arith.constant 1 : i32
      %11 = arith.addi %5, %c1_i32_6 : i32
      %12 = arith.index_cast %11 : i32 to index
      %13 = memref.load %arg1[%12] : memref<80xi32, #tpu.memory_space<smem>>
      %14 = arith.index_cast %13 : i32 to index
      %c0_7 = arith.constant 0 : index
      %15 = vector.load %arg2[%14, %c0_7] : memref<64x128xf32, #tpu.memory_space<vmem>>, vector<1x128xf32>
      %c2_i32 = arith.constant 2 : i32
      %16 = arith.addi %5, %c2_i32 : i32
      %17 = arith.index_cast %16 : i32 to index
      %18 = memref.load %arg1[%17] : memref<80xi32, #tpu.memory_space<smem>>
      %19 = arith.index_cast %18 : i32 to index
      %c0_8 = arith.constant 0 : index
      %20 = vector.load %arg2[%19, %c0_8] : memref<64x128xf32, #tpu.memory_space<vmem>>, vector<1x128xf32>
      %c3_i32 = arith.constant 3 : i32
      %21 = arith.addi %5, %c3_i32 : i32
      %22 = arith.index_cast %21 : i32 to index
      %23 = memref.load %arg1[%22] : memref<80xi32, #tpu.memory_space<smem>>
      %24 = arith.index_cast %23 : i32 to index
      %c0_9 = arith.constant 0 : index
      %25 = vector.load %arg2[%24, %c0_9] : memref<64x128xf32, #tpu.memory_space<vmem>>, vector<1x128xf32>
      %c4_i32 = arith.constant 4 : i32
      %26 = arith.addi %5, %c4_i32 : i32
      %27 = arith.index_cast %26 : i32 to index
      %28 = memref.load %arg1[%27] : memref<80xi32, #tpu.memory_space<smem>>
      %29 = arith.index_cast %28 : i32 to index
      %c0_10 = arith.constant 0 : index
      %30 = vector.load %arg2[%29, %c0_10] : memref<64x128xf32, #tpu.memory_space<vmem>>, vector<1x128xf32>
      %c5_i32_11 = arith.constant 5 : i32
      %31 = arith.addi %5, %c5_i32_11 : i32
      %32 = arith.index_cast %31 : i32 to index
      %33 = memref.load %arg1[%32] : memref<80xi32, #tpu.memory_space<smem>>
      %34 = arith.index_cast %33 : i32 to index
      %c0_12 = arith.constant 0 : index
      %35 = vector.load %arg2[%34, %c0_12] : memref<64x128xf32, #tpu.memory_space<vmem>>, vector<1x128xf32>
      %c6_i32 = arith.constant 6 : i32
      %36 = arith.addi %5, %c6_i32 : i32
      %37 = arith.index_cast %36 : i32 to index
      %38 = memref.load %arg1[%37] : memref<80xi32, #tpu.memory_space<smem>>
      %39 = arith.index_cast %38 : i32 to index
      %c0_13 = arith.constant 0 : index
      %40 = vector.load %arg2[%39, %c0_13] : memref<64x128xf32, #tpu.memory_space<vmem>>, vector<1x128xf32>
      %c7_i32 = arith.constant 7 : i32
      %41 = arith.addi %5, %c7_i32 : i32
      %42 = arith.index_cast %41 : i32 to index
      %43 = memref.load %arg1[%42] : memref<80xi32, #tpu.memory_space<smem>>
      %44 = arith.index_cast %43 : i32 to index
      %c0_14 = arith.constant 0 : index
      %45 = vector.load %arg2[%44, %c0_14] : memref<64x128xf32, #tpu.memory_space<vmem>>, vector<1x128xf32>
      %c8_i32 = arith.constant 8 : i32
      %46 = arith.addi %5, %c8_i32 : i32
      %47 = arith.index_cast %46 : i32 to index
      %48 = memref.load %arg1[%47] : memref<80xi32, #tpu.memory_space<smem>>
      %49 = arith.index_cast %48 : i32 to index
      %c0_15 = arith.constant 0 : index
      %50 = vector.load %arg2[%49, %c0_15] : memref<64x128xf32, #tpu.memory_space<vmem>>, vector<1x128xf32>
      %c9_i32 = arith.constant 9 : i32
      %51 = arith.addi %5, %c9_i32 : i32
      %52 = arith.index_cast %51 : i32 to index
      %53 = memref.load %arg1[%52] : memref<80xi32, #tpu.memory_space<smem>>
      %54 = arith.index_cast %53 : i32 to index
      %c0_16 = arith.constant 0 : index
      %55 = vector.load %arg2[%54, %c0_16] : memref<64x128xf32, #tpu.memory_space<vmem>>, vector<1x128xf32>
      %c10_i32 = arith.constant 10 : i32
      %56 = arith.addi %5, %c10_i32 : i32
      %57 = arith.index_cast %56 : i32 to index
      %58 = memref.load %arg1[%57] : memref<80xi32, #tpu.memory_space<smem>>
      %59 = arith.index_cast %58 : i32 to index
      %c0_17 = arith.constant 0 : index
      %60 = vector.load %arg2[%59, %c0_17] : memref<64x128xf32, #tpu.memory_space<vmem>>, vector<1x128xf32>
      %c11_i32 = arith.constant 11 : i32
      %61 = arith.addi %5, %c11_i32 : i32
      %62 = arith.index_cast %61 : i32 to index
      %63 = memref.load %arg1[%62] : memref<80xi32, #tpu.memory_space<smem>>
      %64 = arith.index_cast %63 : i32 to index
      %c0_18 = arith.constant 0 : index
      %65 = vector.load %arg2[%64, %c0_18] : memref<64x128xf32, #tpu.memory_space<vmem>>, vector<1x128xf32>
      %c12_i32 = arith.constant 12 : i32
      %66 = arith.addi %5, %c12_i32 : i32
      %67 = arith.index_cast %66 : i32 to index
      %68 = memref.load %arg1[%67] : memref<80xi32, #tpu.memory_space<smem>>
      %69 = arith.index_cast %68 : i32 to index
      %c0_19 = arith.constant 0 : index
      %70 = vector.load %arg2[%69, %c0_19] : memref<64x128xf32, #tpu.memory_space<vmem>>, vector<1x128xf32>
      %c13_i32 = arith.constant 13 : i32
      %71 = arith.addi %5, %c13_i32 : i32
      %72 = arith.index_cast %71 : i32 to index
      %73 = memref.load %arg1[%72] : memref<80xi32, #tpu.memory_space<smem>>
      %74 = arith.index_cast %73 : i32 to index
      %c0_20 = arith.constant 0 : index
      %75 = vector.load %arg2[%74, %c0_20] : memref<64x128xf32, #tpu.memory_space<vmem>>, vector<1x128xf32>
      %c14_i32 = arith.constant 14 : i32
      %76 = arith.addi %5, %c14_i32 : i32
      %77 = arith.index_cast %76 : i32 to index
      %78 = memref.load %arg1[%77] : memref<80xi32, #tpu.memory_space<smem>>
      %79 = arith.index_cast %78 : i32 to index
      %c0_21 = arith.constant 0 : index
      %80 = vector.load %arg2[%79, %c0_21] : memref<64x128xf32, #tpu.memory_space<vmem>>, vector<1x128xf32>
      %c15_i32 = arith.constant 15 : i32
      %81 = arith.addi %5, %c15_i32 : i32
      %82 = arith.index_cast %81 : i32 to index
      %83 = memref.load %arg1[%82] : memref<80xi32, #tpu.memory_space<smem>>
      %84 = arith.index_cast %83 : i32 to index
      %c0_22 = arith.constant 0 : index
      %85 = vector.load %arg2[%84, %c0_22] : memref<64x128xf32, #tpu.memory_space<vmem>>, vector<1x128xf32>
      %86 = tpu.concatenate %10, %15, %20, %25, %30, %35, %40, %45, %50, %55, %60, %65, %70, %75, %80, %85 in 0 : vector<1x128xf32>, vector<1x128xf32>, vector<1x128xf32>, vector<1x128xf32>, vector<1x128xf32>, vector<1x128xf32>, vector<1x128xf32>, vector<1x128xf32>, vector<1x128xf32>, vector<1x128xf32>, vector<1x128xf32>, vector<1x128xf32>, vector<1x128xf32>, vector<1x128xf32>, vector<1x128xf32>, vector<1x128xf32> -> vector<16x128xf32>
      %cst = arith.constant dense<0.000000e+00> : vector<16xf32>
      %87 = vector.multi_reduction <add>, %86, %cst [1] : vector<16x128xf32> to vector<16xf32>
      %88 = vector.shape_cast %87 : vector<16xf32> to vector<16x1xf32>
      %cst_23 = arith.constant 1.280000e+02 : f32
      %89 = vector.broadcast %cst_23 : f32 to vector<16x1xf32>
      %90 = arith.divf %88, %89 : vector<16x1xf32>
      %91 = vector.broadcast %90 : vector<16x1xf32> to vector<16x128xf32>
      %92 = arith.subf %86, %91 : vector<16x128xf32>
      %93 = arith.mulf %92, %92 : vector<16x128xf32>
      %cst_24 = arith.constant dense<0.000000e+00> : vector<16xf32>
      %94 = vector.multi_reduction <add>, %93, %cst_24 [1] : vector<16x128xf32> to vector<16xf32>
      %95 = vector.shape_cast %94 : vector<16xf32> to vector<16x1xf32>
      %cst_25 = arith.constant 1.280000e+02 : f32
      %96 = vector.broadcast %cst_25 : f32 to vector<16x1xf32>
      %97 = arith.divf %95, %96 : vector<16x1xf32>
      %cst_26 = arith.constant 9.99999974E-6 : f32
      %98 = vector.broadcast %cst_26 : f32 to vector<16x1xf32>
      %99 = arith.addf %97, %98 : vector<16x1xf32>
      %100 = math.rsqrt %99 : vector<16x1xf32>
      %101 = vector.broadcast %100 : vector<16x1xf32> to vector<16x128xf32>
      %102 = arith.mulf %92, %101 : vector<16x128xf32>
      %103 = vector.broadcast %1 : vector<1x128xf32> to vector<16x128xf32>
      %104 = arith.mulf %102, %103 : vector<16x128xf32>
      %105 = vector.broadcast %2 : vector<1x128xf32> to vector<16x128xf32>
      %106 = arith.addf %104, %105 : vector<16x128xf32>
      %c16_i32_27 = arith.constant 16 : i32
      %107 = arith.muli %arg6, %c16_i32_27 : i32
      %108 = tpu.assume_multiple %107, 16 : i32
      %109 = arith.index_cast %108 : i32 to index
      %c0_28 = arith.constant 0 : index
      %110 = vector.load %arg5[%109, %c0_28] : memref<80x128xf32, #tpu.memory_space<vmem>>, vector<16x128xf32>
      tpu.vector_store %arg5[%109, %c0_28], %106 {strides = array<i32>} : memref<80x128xf32, #tpu.memory_space<vmem>>, vector<16x128xf32>,
    }
    %c5_i32_3 = arith.constant 5 : i32
    return
  }
  func.func @transform_0(%arg0: i32, %arg1: memref<80xi32, #tpu.memory_space<smem>>) -> (i32, i32) {
    %c0_i32 = arith.constant 0 : i32
    %c0_i32_0 = arith.constant 0 : i32
    %c0_i32_1 = arith.constant 0 : i32
    return %c0_i32, %c0_i32_0 : i32, i32
  }
  func.func @transform_1(%arg0: i32, %arg1: memref<80xi32, #tpu.memory_space<smem>>) -> (i32, i32) {
    %c0_i32 = arith.constant 0 : i32
    %c0_i32_0 = arith.constant 0 : i32
    %c0_i32_1 = arith.constant 0 : i32
    return %c0_i32, %c0_i32_0 : i32, i32
  }
  func.func @transform_2(%arg0: i32, %arg1: memref<80xi32, #tpu.memory_space<smem>>) -> (i32, i32) {
    %c0_i32 = arith.constant 0 : i32
    %c0_i32_0 = arith.constant 0 : i32
    %c0_i32_1 = arith.constant 0 : i32
    return %c0_i32, %c0_i32_0 : i32, i32
  }
  func.func @transform_3(%arg0: i32, %arg1: memref<80xi32, #tpu.memory_space<smem>>) -> (i32, i32) {
    %c0_i32 = arith.constant 0 : i32
    %c0_i32_0 = arith.constant 0 : i32
    return %arg0, %c0_i32 : i32, i32
  }
}

</mosaic_0001>

<bundles_post_ra>
// kernel: flexbert_sans_position_embeddings.1
= control target key start
LH: loop header
LB: loop body
LE: loop exit
PB: predicated region body
PF: predicated region fallthrough
CT: control target
= control target key end

     0   :  { %s451_s0 = inlined_call_operand.vmem [shape: s32[80], index: 0, kind: input, shape index: {}]   ;;  %s452_s1 = inlined_call_operand.hbm [shape: f32[64,128], index: 1, kind: input, shape index: {}]   ;;  %s453_s2 = inlined_call_operand.vmem [shape: f32[1,128], index: 2, kind: input, shape index: {}]   ;;  %s454_s3 = inlined_call_operand.vmem [shape: f32[1,128], index: 3, kind: input, shape index: {}]   ;;  %s455_s4 = inlined_call_operand.hbm [shape: f32[80,128], index: 4, kind: output, shape index: {}]  }
   0x1   :  { %s9_s17 = sshll.u32 %s451_s0, 4  ;;  %s10_s17 = int_to_ptr.vmem [resolvable:$true] %s9_s17 }
   0x2   :  { %s275_s18 = scalar_lea.vmem %s10_s17, 16  ;;  %p280_p1 = scmp.lt.s32.totalorder %s10_s17, %s10_s17 }
   0x3   :  { %p276_p0 = scmp.ne.s32.totalorder %s10_s17, %s275_s18  ;;  %p281_p2 = scmp.lt.s32.totalorder %s275_s18, %s275_s18 }
   0x5   :  { %p282_p3 = por %p281_p2, %p280_p1 }
   0x7   :  { %p283_p4 = pnand %p282_p3, %p276_p0 }
   0x9   :  { %286 = shalt.err (!%p283_p4)  }
   0xa   :  { %s341_s19 = smov [#allocation3]  }
   0xb   :  { %12 = dma.vmem_to_smem %s10_s17, 16, %s341_s19, [#allocation2] }
   0xc   :  { %331 = dma.done.wait [#allocation2], 16 }
   0xd   :  { %332 = vsyncadd [#allocation2], 4294967280 }
   0xe   :  { %14 = sfence }
   0xf   :  { %15 = vsyncpa [#allocation5], 0 }
  0x10   :  { %16 = vsyncpa [#allocation6], 0  ;;  %s342_s20 = smov [#allocation4]  }
  0x11   :  { %s22_s21 = sshll.u32 %s342_s20, 4  ;;  %s23_s21 = int_to_ptr.vmem [resolvable:$true] %s22_s21 }
  0x12   :  { %s295_s22 = scalar_lea.vmem %s23_s21, 1024  ;;  %p300_p6 = scmp.lt.s32.totalorder %s23_s21, %s23_s21 }
  0x13   :  { %p296_p5 = scmp.ne.s32.totalorder %s23_s21, %s295_s22  ;;  %p301_p7 = scmp.lt.s32.totalorder %s295_s22, %s295_s22 }
  0x15   :  { %p302_p8 = por %p301_p7, %p300_p6 }
  0x17   :  { %p303_p9 = pnand %p302_p8, %p296_p5 }
  0x19   :  { %306 = shalt.err (!%p303_p9)
}
  0x1a   :  { %s343_s0 = smov 128   ;;  %s344_s23 = smov 8  }
  0x1b   :  { %28 = dma.hbm_to_vmem [thread:$0]  %s452_s1, 1024, %s23_s21, [#allocation5], %s343_s0, %s343_s0, %s344_s23  }
  0x1c   :  { %333 = dma.done.wait [#allocation5], 1024  }
  0x1d   :  { %334 = vsyncadd [#allocation5], 4294966272  ;;  %v383_v0 = vld [vmem:[%s453_s2] ss:$0 sm:$0xff]  ;;  %s390_s30 = smov 0  }
  0x1e   :  { %v388_v1 = vld [vmem:[%s454_s3] ss:$0 sm:$0xff] }
  0x1f LB: > { %s396_s1 = sshll.u32 %s339_s30, 4  ;;  %vm152_vm0 = vcmask 1040384   ;;  %vm154_vm1 = vcmask 1041408   ;;  %vm156_vm2 = vcmask 1042432   ;;  %vm158_vm3 = vcmask 1043456   ;;  %s44_s30 = sadd.s32 1, %s339_s30   ;;  %s339_s30 = sphi %s390_s30, %s44_s30  }
  0x20   : > { %s47_s2 = sld [smem:[#allocation3 + %s396_s1]]  ;;  %s50_s3 = sadd.s32 1, %s396_s1  ;;  %vm160_vm4 = vcmask 1044480   ;;  %vm162_vm5 = vcmask 1045504   ;;  %vm164_vm6 = vcmask 1046528  }
  0x21   : > { %s51_s5 = sld [smem:[#allocation3 + %s50_s3]]  ;;  %s54_s6 = sadd.s32 2, %s396_s1 }
  0x22   : > { %s55_s7 = sld [smem:[#allocation3 + %s54_s6]]  ;;  %s58_s8 = sadd.s32 3, %s396_s1 }
  0x23   : > { %s59_s9 = sld [smem:[#allocation3 + %s58_s8]]  ;;  %s62_s10 = sadd.s32 4, %s396_s1 }
  0x24   : > { %s63_s11 = sld [smem:[#allocation3 + %s62_s10]]  ;;  %s66_s12 = sadd.s32 5, %s396_s1 }
  0x25   : > { %s67_s13 = sld [smem:[#allocation3 + %s66_s12]]  ;;  %s70_s14 = sadd.s32 6, %s396_s1 }
  0x26   : > { %s405_s15 = sld [smem:[#allocation3 + %s70_s14]]  ;;  %s74_s16 = sadd.s32 7, %s396_s1 }
  0x27   : > { %s48_s17 = scalar_lea.vmem [#allocation4], %s47_s2  ;;  %s52_s18 = scalar_lea.vmem [#allocation4], %s51_s5 }
  0x28   : > { %v49_v2 = vld [vmem:[%s48_s17] sm:$0x1]  ;;  %s408_s19 = sld [smem:[#allocation3 + %s74_s16]]  ;;  %s56_s20 = scalar_lea.vmem [#allocation4], %s55_s7 }
  0x29   : > { %v53_v3 = vld [vmem:[%s52_s18] sm:$0x1]  ;;  %s78_s21 = sadd.s32 8, %s396_s1  ;;  %s60_s22 = scalar_lea.vmem [#allocation4], %s59_s9 }
  0x2a   : > { %v57_v4 = vld [vmem:[%s56_s20] sm:$0x1]  ;;  %v111_v5 = vrot.slane %v53_v3, 7  ;;  %s411_s24 = sld [smem:[#allocation3 + %s78_s21]]  ;;  %s64_s25 = scalar_lea.vmem [#allocation4], %s63_s11 }
  0x2b   : > { %v61_v6 = vld [vmem:[%s60_s22] sm:$0x1]  ;;  %v114_v7 = vrot.slane %v57_v4, 6  ;;  %s82_s26 = sadd.s32 9, %s396_s1  ;;  %s68_s27 = scalar_lea.vmem [#allocation4], %s67_s13 }
  0x2c   : > { %v65_v8 = vld [vmem:[%s64_s25] sm:$0x1]  ;;  %v117_v9 = vrot.slane %v61_v6, 5  ;;  %v153_v10 = vsel %vm152_vm0, %v49_v2, %v111_v5  ;;  %s83_s28 = sld [smem:[#allocation3 + %s82_s26]]  ;;  %s72_s29 = scalar_lea.vmem [#allocation4], %s405_s15 }
  0x2d   : > { %v69_v11 = vld [vmem:[%s68_s27] sm:$0x1]  ;;  %v120_v12 = vrot.slane %v65_v8, 4  ;;  %v155_v13 = vsel %vm154_vm1, %v153_v10, %v114_v7  ;;  %s86_s2 = sadd.s32 10, %s396_s1  ;;  %s90_s3 = sadd.s32 11, %s396_s1 }
  0x2e   : > { %v73_v14 = vld [vmem:[%s72_s29] sm:$0x1]  ;;  %v123_v15 = vrot.slane %v69_v11, 3  ;;  %v157_v16 = vsel %vm156_vm2, %v155_v13, %v117_v9  ;;  %s87_s5 = sld [smem:[#allocation3 + %s86_s2]]  ;;  %s76_s6 = scalar_lea.vmem [#allocation4], %s408_s19 }
  0x2f   : > { %v126_v17 = vrot.slane %v73_v14, 2  ;;  %v159_v18 = vsel %vm158_vm3, %v157_v16, %v120_v12  ;;  %v77_v19 = vld [vmem:[%s76_s6] sm:$0x1]  ;;  %s91_s7 = sld [smem:[#allocation3 + %s90_s3]]  ;;  %s94_s8 = sadd.s32 12, %s396_s1 }
  0x30   : > { %v161_v20 = vsel %vm160_vm4, %v159_v18, %v123_v15  ;;  %v129_v21 = vrot.slane %v77_v19, 1  ;;  %s95_s9 = sld [smem:[#allocation3 + %s94_s8]]  ;;  %s98_s10 = sadd.s32 13, %s396_s1 }
  0x31   : > { %v163_v22 = vsel %vm162_vm5, %v161_v20, %v126_v17  ;;  %s102_s11 = sadd.s32 14, %s396_s1  ;;  %s99_s12 = sld [smem:[#allocation3 + %s98_s10]] }
  0x32   : > { %v165_v23 = vsel %vm164_vm6, %v163_v22, %v129_v21  ;;  %s80_s13 = scalar_lea.vmem [#allocation4], %s411_s24  ;;  %s84_s14 = scalar_lea.vmem [#allocation4], %s83_s28 }
  0x33   : > { %173 = vadd.xlane.f32.xlu0 %v165_v23  ;;  %v81_v24 = vld [vmem:[%s80_s13] sm:$0x1]  ;;  %s103_s15 = sld [smem:[#allocation3 + %s102_s11]]  ;;  %s106_s16 = sadd.s32 15, %s396_s1 }
  0x34   : > { %v85_v25 = vld [vmem:[%s84_s14] sm:$0x1]  ;;  %s107_s17 = sld [smem:[#allocation3 + %s106_s16]]  ;;  %s88_s18 = scalar_lea.vmem [#allocation4], %s87_s5 }
  0x35   : > { %v132_v26 = vrot.slane %v85_v25, 7  ;;  %v89_v27 = vld [vmem:[%s88_s18] sm:$0x1]  ;;  %s92_s19 = scalar_lea.vmem [#allocation4], %s91_s7  ;;  %s212_s25 = scalar_lea.vmem [#allocation7], %s396_s1 }
  0x36   : > { %v93_v28 = vld [vmem:[%s92_s19] sm:$0x1]  ;;  %v135_v29 = vrot.slane %v89_v27, 6  ;;  %s96_s20 = scalar_lea.vmem [#allocation4], %s95_s9  ;;  %p41_p10 = scmp.ge.s32.totalorder %s44_s30, 5  }
  0x37   : > { %v166_v30 = vsel %vm152_vm0, %v81_v24, %v132_v26  ;;  %v97_v31 = vld [vmem:[%s96_s20] sm:$0x1]  ;;  %v138_v32 = vrot.slane %v93_v28, 5  ;;  %s100_s21 = scalar_lea.vmem [#allocation4], %s99_s12  ;;  %s345_s26 = smov (%p41_p10), [#allocation7]  }
  0x38   : > { %v141_v33 = vrot.slane %v97_v31, 4  ;;  %v167_v34 = vsel %vm154_vm1, %v166_v30, %v135_v29  ;;  %v101_v35 = vld [vmem:[%s100_s21] sm:$0x1]  ;;  %s220_s27 = sshll.u32 (%p41_p10), %s345_s26, 4  ;;  %s221_s27 = int_to_ptr.vmem [resolvable:$true] %s220_s27 }
  0x39   : > { %v168_v36 = vsel %vm156_vm2, %v167_v34, %v138_v32  ;;  %s104_s22 = scalar_lea.vmem [#allocation4], %s103_s15  ;;  %v144_v38 = vrot.slane %v101_v35, 3  ;;  %s307_s28 = scalar_lea.vmem (%p41_p10), %s221_s27, 1280 }
  0x3a   : > { %v105_v37 = vld [vmem:[%s104_s22] sm:$0x1]  ;;  %v169_v39 = vsel %vm158_vm3, %v168_v36, %v141_v33  ;;  %s108_s24 = scalar_lea.vmem [#allocation4], %s107_s17  ;;  %p308_p11 = scmp.ne.s32.totalorder (%p41_p10), %s221_s27, %s307_s28 }
  0x3b   : > { %v109_v40 = vld [vmem:[%s108_s24] sm:$0x1]  ;;  %v147_v41 = vrot.slane %v105_v37, 2  ;;  %v170_v43 = vsel %vm160_vm4, %v169_v39, %v144_v38  ;;  %p312_p12 = scmp.lt.s32.totalorder (%p41_p10), %s221_s27, %s221_s27  ;;  %p313_p13 = scmp.lt.s32.totalorder (%p41_p10), %s307_s28, %s307_s28 }
  0x3c   : > { %v150_v42 = vrot.slane %v109_v40, 1 }
  0x3d   : > { %v171_v44 = vsel %vm162_vm5, %v170_v43, %v147_v41  ;;  %p314_p0 = por (%p41_p10), %p313_p13, %p312_p12 }
  0x3e   : > { %v172_v45 = vsel %vm164_vm6, %v171_v44, %v150_v42 }
  0x3f   : > { %175 = vadd.xlane.f32.xlu0 %v172_v45  ;;  %p315_p1 = pnand (%p41_p10), %p314_p0, %p308_p11 }
  0xbc   : > { %v174_v46 = vpop.xlane.xlu0 %173 }
  0xbd   : > { %v178_v47 = vmul.f32 0.0078125, %v174_v46 }
  0xbf   : > { %v180_v48 = vsub.f32 %v165_v23, %v178_v47 }
  0xc1   : > { %v182_v49 = vmul.f32 %v180_v48, %v180_v48 }
  0xc3   : > { %184 = vadd.xlane.f32.xlu1 %v182_v49 }
  0xc8   : > { %v176_v50 = vpop.xlane.xlu0 %175 }
  0xc9   : > { %v179_v51 = vmul.f32 0.0078125, %v176_v50 }
  0xcb   : > { %v181_v52 = vsub.f32 %v172_v45, %v179_v51 }
  0xcd   : > { %v183_v53 = vmul.f32 %v181_v52, %v181_v52 }
  0xcf   : > { %186 = vadd.xlane.f32.xlu1 %v183_v53 }
 0x14c   : > { %v185_v54 = vpop.xlane.xlu1 %184 }
 0x14d   : > { %v188_v55 = vmul.f32 0.0078125, %v185_v54 }
 0x14f   : > { %v190_v56 = vadd.f32 1e-05, %v188_v55 }
 0x151   : > { %271 = vrsqrt.f32 %v190_v56 }
 0x158   : > { %v187_v57 = vpop.xlane.xlu1 %186 }
 0x159   : > { %v189_v58 = vmul.f32 0.0078125, %v187_v57 }
 0x15b   : > { %v191_v59 = vadd.f32 1e-05, %v189_v58 }
 0x15d   : > { %273 = vrsqrt.f32 %v191_v59 }
 0x15e   : > { %v272_v60 = vpop.eup %271 }
 0x15f   : > { %v194_v61 = vmul.f32 %v272_v60, %v180_v48 }
 0x161   : > { %v202_v62 = vmul.f32 %v383_v0, %v194_v61 }
 0x163   : > { %v210_v63 = vadd.f32 %v388_v1, %v202_v62 }
 0x165   : > { %213 = vst [vmem:[%s212_s25] sm:$0xff] %v210_v63 }
 0x16a   : > { %v274_v2 = vpop.eup %273 }
 0x16b   : > { %v195_v3 = vmul.f32 %v274_v2, %v181_v52 }
 0x16d   : > { %v203_v4 = vmul.f32 %v383_v0, %v195_v3  ;;  %43 = sbr.rel (!%p41_p10) target bundleno = 31 (0x1f), region = 60 }
 0x16f   : > { %v211_v5 = vadd.f32 %v388_v1, %v203_v4 }
 0x171   : > { %214 = vst [vmem:[%s212_s25 + $0x8] sm:$0xff] %v211_v5 }
 0x172   :  { %318 = shalt.err (!%p315_p1)
}
 0x173   :  { %226 = dma.vmem_to_hbm [thread:$0]  %s221_s27, 1280, %s455_s4, [#allocation6], %s343_s0, %s343_s0, %s344_s23  }
 0x174   :  { %335 = dma.done.wait [#allocation6], 1280  }
 0x175   :  { %336 = vsyncadd [#allocation6], 4294966016 }
 0x176   :  { %230 = vsyncpa [#allocation5], 1 }
 0x177   :  { %231 = vsyncpa [#allocation6], 1 }

</bundles_post_ra>
